<compile_context>
chip_gen: v6e
topology: v6e:2x2x1
jax: 0.10.0
libtpu: 0.0.40
codegen_flags: <defaults>
</compile_context>

<pallas_src>
import functools

import jax
import jax.numpy as jnp
from jax.experimental import pallas as pl
from jax.experimental.pallas import tpu as pltpu


# Default rows-per-grid-step.  Big enough (>=512 rows) to sit near the HBM roofline
# on v5e/v6e, small enough that double-buffered activation tiles + the f32 hidden
# intermediate + resident weights stay far under v7x's 64 MiB VMEM.
DEFAULT_BLOCK_BATCH = 512

_LANE = 128  # vreg lane width


def _round_up(n, m):
    return ((n + m - 1) // m) * m


def _dropout_bits(shape, seed_scalar, tile_idx):
    """Pseudo-random uint32 bits per element via a counter hash (murmur3 fmix32).

    Plain integer VPU ops only -> lowers on real TPUs *and* in interpret mode.
    """
    rows = jax.lax.broadcasted_iota(jnp.uint32, shape, 0)
    cols = jax.lax.broadcasted_iota(jnp.uint32, shape, 1)
    ctr = rows * jnp.uint32(shape[1]) + cols
    salt = (seed_scalar.astype(jnp.uint32) * jnp.uint32(0x9E3779B1)
            + tile_idx.astype(jnp.uint32) * jnp.uint32(0x85EBCA77)
            + jnp.uint32(0x165667B1))
    x = ctr ^ salt
    x = (x ^ (x >> 16)) * jnp.uint32(0x85EBCA6B)
    x = (x ^ (x >> 13)) * jnp.uint32(0xC2B2AE35)
    x = x ^ (x >> 16)
    return x


def _mlp_kernel(seed_ref, x_ref, w1_ref, b1_ref, w2_ref, b2_ref, o_ref,
                *, dropout_prob: float, training: bool):
    # fc1: (TB, In) @ (In, Hp)  -- bf16 operands, f32 accumulation on the MXU.
    x_b = x_ref[...].astype(jnp.bfloat16)
    h = jnp.dot(x_b, w1_ref[...], preferred_element_type=jnp.float32)
    # bias + ReLU in f32 (padded hidden lanes: 0 weight col + 0 bias -> stay 0).
    h = jnp.maximum(h + b1_ref[...], 0.0)

    if training and dropout_prob > 0.0:
        # Inverted dropout: zero with prob p, scale survivors by 1/(1-p).
        # Integer threshold compare on raw bits (no float uniform construction).
        threshold = min(int(round(float(dropout_prob) * (2 ** 32))), 2 ** 32 - 1)
        bits = _dropout_bits(h.shape, seed_ref[0], pl.program_id(0))
        keep = bits >= jnp.uint32(threshold)
        h = jnp.where(keep, h, 0.0) * jnp.float32(1.0 / (1.0 - float(dropout_prob)))

    # fc2: (TB, Hp) @ (Hp, OutP) -- lane-dense, unmasked stores.
    out = jnp.dot(h.astype(jnp.bfloat16), w2_ref[...],
                  preferred_element_type=jnp.float32)
    o_ref[...] = (out + b2_ref[...]).astype(o_ref.dtype)


def feature_extractor_forward(x, params, *, dropout_prob=0.5, training=False,
                              seed=0, block_batch=DEFAULT_BLOCK_BATCH):
    """x: (batch, input_size) f32.

    params: dict with pre-transposed / pre-cast / lane-padded weights (see
    params_from_torch_layout):
      w1t: (In, Hp)   bf16,  b1: (1, Hp)   f32,
      w2t: (Hp, OutP) bf16,  b2: (1, OutP) f32,
      output_size: true (unpadded) output feature count.
    """
    batch, input_size = x.shape
    hidden_p = params["w1t"].shape[1]
    out_p = params["w2t"].shape[1]
    output_size = int(params["output_size"])

    # --- batch tiling (pad rows so the tile divides the batch) ---
    tb = int(min(block_batch, batch))
    if batch > tb and tb % 8 != 0:          # sublane alignment when actually tiling
        tb = max(8, (tb // 8) * 8)
    pad = (-batch) % tb
    if pad:
        x = jnp.pad(x, ((0, pad), (0, 0)))
    padded_batch = batch + pad
    num_tiles = padded_batch // tb

    seed_arr = jnp.asarray([seed], dtype=jnp.int32)

    kernel = functools.partial(_mlp_kernel,
                               dropout_prob=float(dropout_prob),
                               training=bool(training))

    # VMEM budget: double-buffered activation tiles + f32 hidden + resident weights.
    vmem_bytes = (2 * tb * (input_size + out_p) * 4
                  + tb * hidden_p * 4
                  + (input_size * hidden_p + hidden_p * out_p) * 2
                  + (hidden_p + out_p) * 4)
    vmem_limit = int(min(max(2 * vmem_bytes, 4 * 1024 * 1024), 48 * 1024 * 1024))

    cost = pl.CostEstimate(
        flops=2 * padded_batch * (input_size * hidden_p + hidden_p * out_p),
        transcendentals=0,
        bytes_accessed=(padded_batch * (input_size + out_p) * 4
                        + (input_size * hidden_p + hidden_p * out_p) * 2
                        + (hidden_p + out_p) * 4),
    )

    grid_spec = pltpu.PrefetchScalarGridSpec(
        num_scalar_prefetch=1,              # seed -> SMEM, kernel arg 0
        grid=(num_tiles,),
        in_specs=[
            pl.BlockSpec((tb, input_size), lambda i, seed: (i, 0)),           # x tile
            pl.BlockSpec((input_size, hidden_p), lambda i, seed: (0, 0)),     # w1t (resident)
            pl.BlockSpec((1, hidden_p), lambda i, seed: (0, 0)),              # b1  (resident)
            pl.BlockSpec((hidden_p, out_p), lambda i, seed: (0, 0)),          # w2t (resident)
            pl.BlockSpec((1, out_p), lambda i, seed: (0, 0)),                 # b2  (resident)
        ],
        out_specs=pl.BlockSpec((tb, out_p), lambda i, seed: (i, 0)),
    )

    out = pl.pallas_call(
        kernel,
        out_shape=jax.ShapeDtypeStruct((padded_batch, out_p), x.dtype),
        grid_spec=grid_spec,
        compiler_params=pltpu.CompilerParams(
            dimension_semantics=("parallel",),
            vmem_limit_bytes=vmem_limit,
        ),
        cost_estimate=cost,
    )(seed_arr, x, params["w1t"], params["b1"], params["w2t"], params["b2"])

    return out[:batch, :output_size]


def params_from_torch_layout(w1, b1, w2, b2):
    """One-time conversion from PyTorch nn.Linear layout ((out,in) weights) to the
    kernel layout: pre-transposed (in,out) bf16 weights with hidden/output feature
    dims zero-padded to multiples of 128 lanes, (1,out) f32 biases.  Padding here
    means zero per-call cost and lane-dense kernel compute/stores."""
    w1 = jnp.asarray(w1, dtype=jnp.float32)     # (H, In)
    b1 = jnp.asarray(b1, dtype=jnp.float32)     # (H,)
    w2 = jnp.asarray(w2, dtype=jnp.float32)     # (Out, H)
    b2 = jnp.asarray(b2, dtype=jnp.float32)     # (Out,)

    hidden_size, input_size = w1.shape
    output_size = w2.shape[0]
    hidden_p = _round_up(hidden_size, _LANE)
    out_p = _round_up(output_size, _LANE)

    w1t = jnp.zeros((input_size, hidden_p), jnp.float32).at[:, :hidden_size].set(w1.T)
    b1p = jnp.zeros((1, hidden_p), jnp.float32).at[:, :hidden_size].set(b1[None, :])
    w2t = jnp.zeros((hidden_p, out_p), jnp.float32).at[:hidden_size, :output_size].set(w2.T)
    b2p = jnp.zeros((1, out_p), jnp.float32).at[:, :output_size].set(b2[None, :])

    return {
        "w1t": w1t.astype(jnp.bfloat16),
        "b1": b1p,
        "w2t": w2t.astype(jnp.bfloat16),
        "b2": b2p,
        "output_size": output_size,
    }


def init_params(key, input_size, hidden_size, output_size):
    """nn.Linear-style uniform(-1/sqrt(fan_in), 1/sqrt(fan_in)) init, stored directly
    in the kernel layout (pre-transposed, pre-cast, lane-padded)."""
    k1, k2, k3, k4 = jax.random.split(key, 4)
    lim1 = 1.0 / (input_size ** 0.5)
    lim2 = 1.0 / (hidden_size ** 0.5)
    w1 = jax.random.uniform(k1, (hidden_size, input_size), jnp.float32, -lim1, lim1)
    b1 = jax.random.uniform(k2, (hidden_size,), jnp.float32, -lim1, lim1)
    w2 = jax.random.uniform(k3, (output_size, hidden_size), jnp.float32, -lim2, lim2)
    b2 = jax.random.uniform(k4, (output_size,), jnp.float32, -lim2, lim2)
    return params_from_torch_layout(w1, b1, w2, b2)


def _ref_forward_eval(x, params):
    """Plain-JAX eval-mode reference using the same bf16 weights / f32 accumulation."""
    h = jnp.dot(x.astype(jnp.bfloat16), params["w1t"],
                preferred_element_type=jnp.float32)
    h = jnp.maximum(h + params["b1"], 0.0)
    o = jnp.dot(h.astype(jnp.bfloat16), params["w2t"],
                preferred_element_type=jnp.float32)
    return (o + params["b2"])[:, :int(params["output_size"])]


if __name__ == "__main__":
    # Small shapes consistent with the module: x is (batch, input_size).
    batch, input_size, hidden_size, output_size = 64, 32, 64, 16

    key = jax.random.PRNGKey(0)
    kx, kp = jax.random.split(key)
    x = jax.random.normal(kx, (batch, input_size), jnp.float32)
    params = init_params(kp, input_size, hidden_size, output_size)

    # Eval-mode forward (dropout is identity) with a small batch tile so the grid
    # (4 steps) and resident-weight pipelining are actually exercised.
    out = jax.block_until_ready(
        feature_extractor_forward(x, params, dropout_prob=0.5, training=False,
                                  block_batch=16))
    ref = _ref_forward_eval(x, params)
    assert out.shape == (batch, output_size)
    assert jnp.allclose(out, ref, atol=1e-2, rtol=1e-2), \
        float(jnp.max(jnp.abs(out - ref)))

    # Training-mode path (in-kernel dropout, per-tile seeds).
    # TODO(synk): dropout mask uses a counter-hash PRNG, not torch's RNG stream
    # (bitwise parity with torch dropout is not reproducible anyway).
    out_train = jax.block_until_ready(
        feature_extractor_forward(x, params, dropout_prob=0.5, training=True,
                                  seed=123, block_batch=16))
    assert out_train.shape == (batch, output_size)
    assert bool(jnp.all(jnp.isfinite(out_train)))

    print("KERNEL_OK")
</pallas_src>

<mosaic_0001>
module attributes {stable_mosaic.version = 11 : i64} {
  func.func @_mlp_kernel(%arg0: i32, %arg1: memref<1xi32, #tpu.memory_space<smem>>, %arg2: memref<16x32xf32, #tpu.memory_space<vmem>>, %arg3: memref<32x128xbf16, #tpu.memory_space<vmem>>, %arg4: memref<1x128xf32, #tpu.memory_space<vmem>>, %arg5: memref<128x128xbf16, #tpu.memory_space<vmem>>, %arg6: memref<1x128xf32, #tpu.memory_space<vmem>>, %arg7: memref<16x128xf32, #tpu.memory_space<vmem>>) attributes {dimension_semantics = [#tpu.dimension_semantics<parallel>], iteration_bounds = array<i64: 4>, scalar_prefetch = 1 : i64, scratch_operands = 0 : i64, tpu.core_type = #tpu.core_type<tc>, window_params = [{transform_indices = @transform_0, window_bounds = array<i64: 16, 32>}, {pipeline_mode = #tpu.pipeline_mode<synchronous>, transform_indices = @transform_1, window_bounds = array<i64: 32, 128>}, {pipeline_mode = #tpu.pipeline_mode<synchronous>, transform_indices = @transform_2, window_bounds = array<i64: 1, 128>}, {pipeline_mode = #tpu.pipeline_mode<synchronous>, transform_indices = @transform_3, window_bounds = array<i64: 128, 128>}, {pipeline_mode = #tpu.pipeline_mode<synchronous>, transform_indices = @transform_4, window_bounds = array<i64: 1, 128>}, {transform_indices = @transform_5, window_bounds = array<i64: 16, 128>}]} {
    %c0 = arith.constant 0 : index
    %c0_0 = arith.constant 0 : index
    %0 = vector.load %arg2[%c0, %c0_0] : memref<16x32xf32, #tpu.memory_space<vmem>>, vector<16x32xf32>
    %1 = arith.truncf %0 : vector<16x32xf32> to vector<16x32xbf16>
    %c0_1 = arith.constant 0 : index
    %c0_2 = arith.constant 0 : index
    %2 = vector.load %arg3[%c0_1, %c0_2] : memref<32x128xbf16, #tpu.memory_space<vmem>>, vector<32x128xbf16>
    %cst = arith.constant dense<0.000000e+00> : vector<16x128xf32>
    %3 = tpu.matmul %1, %2, %cst {dimension_numbers = #tpu.dot_dimension_numbers<[1], [0], [0], [1], [0, 0, 1, 1], [], []>} : vector<16x32xbf16>, vector<32x128xbf16>, vector<16x128xf32> -> vector<16x128xf32>
    %c0_3 = arith.constant 0 : index
    %c0_4 = arith.constant 0 : index
    %4 = vector.load %arg4[%c0_3, %c0_4] : memref<1x128xf32, #tpu.memory_space<vmem>>, vector<1x128xf32>
    %5 = vector.broadcast %4 : vector<1x128xf32> to vector<16x128xf32>
    %6 = arith.addf %3, %5 : vector<16x128xf32>
    %cst_5 = arith.constant 0.000000e+00 : f32
    %7 = vector.broadcast %cst_5 : f32 to vector<16x128xf32>
    %8 = arith.maximumf %6, %7 : vector<16x128xf32>
    %9 = arith.truncf %8 : vector<16x128xf32> to vector<16x128xbf16>
    %c0_6 = arith.constant 0 : index
    %c0_7 = arith.constant 0 : index
    %10 = vector.load %arg5[%c0_6, %c0_7] : memref<128x128xbf16, #tpu.memory_space<vmem>>, vector<128x128xbf16>
    %cst_8 = arith.constant dense<0.000000e+00> : vector<16x128xf32>
    %11 = tpu.matmul %9, %10, %cst_8 {dimension_numbers = #tpu.dot_dimension_numbers<[1], [0], [0], [1], [0, 0, 1, 1], [], []>} : vector<16x128xbf16>, vector<128x128xbf16>, vector<16x128xf32> -> vector<16x128xf32>
    %c0_9 = arith.constant 0 : index
    %c0_10 = arith.constant 0 : index
    %12 = vector.load %arg6[%c0_9, %c0_10] : memref<1x128xf32, #tpu.memory_space<vmem>>, vector<1x128xf32>
    %13 = vector.broadcast %12 : vector<1x128xf32> to vector<16x128xf32>
    %14 = arith.addf %11, %13 : vector<16x128xf32>
    %c0_11 = arith.constant 0 : index
    %c0_12 = arith.constant 0 : index
    %15 = vector.load %arg7[%c0_11, %c0_12] : memref<16x128xf32, #tpu.memory_space<vmem>>, vector<16x128xf32>
    tpu.vector_store %arg7[%c0_11, %c0_12], %14 {strides = array<i32>} : memref<16x128xf32, #tpu.memory_space<vmem>>, vector<16x128xf32>,
    return
  }
  func.func @transform_0(%arg0: i32, %arg1: memref<1xi32, #tpu.memory_space<smem>>) -> (i32, i32) {
    %c0_i32 = arith.constant 0 : i32
    %c0_i32_0 = arith.constant 0 : i32
    return %arg0, %c0_i32 : i32, i32
  }
  func.func @transform_1(%arg0: i32, %arg1: memref<1xi32, #tpu.memory_space<smem>>) -> (i32, i32) {
    %c0_i32 = arith.constant 0 : i32
    %c0_i32_0 = arith.constant 0 : i32
    %c0_i32_1 = arith.constant 0 : i32
    return %c0_i32, %c0_i32_0 : i32, i32
  }
  func.func @transform_2(%arg0: i32, %arg1: memref<1xi32, #tpu.memory_space<smem>>) -> (i32, i32) {
    %c0_i32 = arith.constant 0 : i32
    %c0_i32_0 = arith.constant 0 : i32
    %c0_i32_1 = arith.constant 0 : i32
    return %c0_i32, %c0_i32_0 : i32, i32
  }
  func.func @transform_3(%arg0: i32, %arg1: memref<1xi32, #tpu.memory_space<smem>>) -> (i32, i32) {
    %c0_i32 = arith.constant 0 : i32
    %c0_i32_0 = arith.constant 0 : i32
    %c0_i32_1 = arith.constant 0 : i32
    return %c0_i32, %c0_i32_0 : i32, i32
  }
  func.func @transform_4(%arg0: i32, %arg1: memref<1xi32, #tpu.memory_space<smem>>) -> (i32, i32) {
    %c0_i32 = arith.constant 0 : i32
    %c0_i32_0 = arith.constant 0 : i32
    %c0_i32_1 = arith.constant 0 : i32
    return %c0_i32, %c0_i32_0 : i32, i32
  }
  func.func @transform_5(%arg0: i32, %arg1: memref<1xi32, #tpu.memory_space<smem>>) -> (i32, i32) {
    %c0_i32 = arith.constant 0 : i32
    %c0_i32_0 = arith.constant 0 : i32
    return %arg0, %c0_i32 : i32, i32
  }
}

</mosaic_0001>

<bundles_post_ra>
// kernel: tpu_custom_call.1
= control target key start
LH: loop header
LB: loop body
LE: loop exit
PB: predicated region body
PF: predicated region fallthrough
CT: control target
= control target key end

     0   :  { %12 = vsyncpa [#allocation5], 0  ;;  %s851_s0 = inlined_call_operand.<no memory space> [shape: s32[1], index: 0, kind: input, shape index: {}]   ;;  %s852_s1 = inlined_call_operand.vmem [shape: f32[64,32], index: 1, kind: input, shape index: {}]   ;;  %s853_s2 = inlined_call_operand.vmem [shape: bf16[32,128], index: 2, kind: input, shape index: {}]   ;;  %s854_s3 = inlined_call_operand.vmem [shape: f32[1,128], index: 3, kind: input, shape index: {}]   ;;  %s855_s4 = inlined_call_operand.vmem [shape: bf16[128,128], index: 4, kind: input, shape index: {}]   ;;  %s856_s5 = inlined_call_operand.vmem [shape: f32[1,128], index: 5, kind: input, shape index: {}]   ;;  %s857_s6 = inlined_call_operand.hbm [shape: f32[64,128], index: 6, kind: output, shape index: {}]  }
   0x1   :  { %14 = vsyncpa [#allocation5 + $0x1], 0  ;;  %s714_s0 = smov 0   ;;  %s716_s21 = smov 0  }
   0x2   :  { %s718_s22 = smov 0   ;;  %s720_s23 = smov 0  }
   0x3 LB: > { %s735_s24 = sadd.s32 4294967295, %s672_s23   ;;  %s493_s25 = sadd.s32 4294967294, %s672_s23   ;;  %s672_s23 = sphi %s720_s23, %s863_s23   ;;  %s668_s22 = sphi %s718_s22, %s862_s22   ;;  %s664_s21 = sphi %s716_s21, %s861_s21   ;;  %s660_s0 = sphi %s714_s0, %s860_s0  }
   0x4   : > { %s739_s26 = sadd.s32 1, %s672_s23   ;;  %s137_s27 = sadd.s32 1, %s668_s22 }
   0x5   : > { %s134_s28 = ssub.s32 %s672_s23, %s739_s26  ;;  %p147_p0 = scmp.ne.s32.totalorder %s668_s22, %s664_s21 }
   0x6   : > { %p135_p1 = scmp.eq.s32.totalorder %s134_s28, 0  ;;  %p148_p2 = scmp.eq.s32.totalorder %s735_s24, 3 }
   0x7   : > { %p153_p3 = scmp.ne.s32.totalorder %s664_s21, %s660_s0  ;;  %p154_p4 = scmp.eq.s32.totalorder %s493_s25, 3 }
   0x8   : > { %s750_s29 = scalar_select %p135_p1, %s668_s22, %s137_s27  }
   0x9   : > { %p752_p5 = por %p148_p2, %p147_p0  ;;  %p756_p6 = por %p154_p4, %p153_p3 }
   0xa   : > { %p496_p7 = scmp.ge.s32.totalorder %s672_s23, 1  ;;  %p193_p8 = scmp.lt.s32.totalorder %s672_s23, 5 }
   0xc   : > { %p194_p9 = pnand %p496_p7, %p193_p8 }
   0xd   : > { %s498_s12 = sshll.u32 (!%p194_p9), %s735_s24, 1  ;;  %s218_s19 = sand.u32 (!%p194_p9), 1, %s664_s21  }
   0xe   : > { %197 = sbr.rel (%p194_p9) target bundleno = 444 (0x1bc), region = 40  ;;  %p222_p10 = scmp.lt.s32.totalorder (!%p194_p9), %s498_s12, 7 }
   0xf   : > { %s497_s20 = sshll.u32 (!%p194_p9), %s218_s19, 4  ;;  %s518_s9 = sshll.u32 (!%p194_p9), %s735_s24, 8 }
  0x10   : > { %s220_s28 = scalar_lea.vmem (!%p194_p9), [#allocation4], %s497_s20  ;;  %s811_s13 = scalar_lea.sflag (!%p194_p9), [#allocation5], %s218_s19 }
  0x11   : > { %s431_s8 = sshll.u32 (!%p194_p9), %s220_s28, 4  ;;  %s676_s24 = smov (!%p194_p9), [#allocation4]   ;;  %s804_s8 = int_to_ptr.vmem [resolvable:$true] %s431_s8 }
  0x12   : > { %s612_s14 = scalar_lea.vmem (!%p194_p9), %s804_s8, 256  ;;  %s616_s15 = sshll.u32 (!%p194_p9), %s676_s24, 4  ;;  %s617_s15 = int_to_ptr.vmem [resolvable:$false] %s616_s15 }
  0x13   : > { %v602_v0 = vld [vmem:[%s853_s2 + $0x8] sm:$0xff]   ;;  %v674_v1 = vmov 0.0   ;;  %v603_v2 = vld [vmem:[%s853_s2] sm:$0xff]   ;;  %vm675_vm0 = vmmov 0   ;;  %v604_v3 = vld [vmem:[%s855_s4 + $0x38] sm:$0xff]   ;;  %s865_s12 = smov (!%p222_p10, %s498_s12), 7  ;;  %p613_p11 = scmp.ne.s32.totalorder %s804_s8, %s612_s14 }
  0x14   : > { %531 = vmatprep.subr.bf16.mxu0 %v674_v1  ;;  %539 = vmatprep.subr.bf16.mxu1 %v674_v1  ;;  %v605_v4 = vld [vmem:[%s855_s4 + $0x30] sm:$0xff]   ;;  %s499_s17 = sshll.u32 %s865_s12, 3  ;;  %v606_v5 = vld [vmem:[%s855_s4 + $0x28] sm:$0xff]   ;;  %vm255_vm1 = vcmask 261120   ;;  %v607_v9 = vld [vmem:[%s855_s4 + $0x20] sm:$0xff]   ;;  %s809_s12 = scalar_lea.hbm %s857_s6, %s518_s9 }
  0x15   : > { %532 = vmatpush3.bf16.msra.mxu0 %v602_v0  ;;  %535 = vmatprep.mubr.msk.bf16.mxu0 %vm675_vm0, %v674_v1  ;;  %s225_s27 = scalar_lea.vmem %s852_s1, %s499_s17  ;;  %v608_v10 = vld [vmem:[%s855_s4 + $0x18] sm:$0xff]   ;;  %v609_v11 = vld [vmem:[%s855_s4 + $0x10] sm:$0xff]   ;;  %v610_v12 = vld [vmem:[%s855_s4 + $0x8] sm:$0xff]   ;;  %p614_p12 = pnand %p613_p11, %p752_p5 }
  0x16   : > { %533 = vmatprep.subr.bf16.mxu0 %v674_v1  ;;  %555 = vmatprep.mubr.msk.bf16.mxu1 %vm675_vm0, %v674_v1  ;;  %v229_v6 = vld [vmem:[%s225_s27] sm:$0xff]  ;;  %v230_v7 = vld [vmem:[%s225_s27 + $0x8] sm:$0xff]  ;;  %s618_s16 = scalar_lea.vmem %s617_s15, 512  ;;  %p619_p0 = scmp.lt.s32.totalorder %s804_s8, %s617_s15 }
  0x17   : > { %540 = vmatpush3.bf16.msra.mxu1 %v604_v3  ;;  %v231_v8 = vpack.c.bf16 %v230_v7, %v229_v6  ;;  %v611_v13 = vld [vmem:[%s855_s4] sm:$0xff]   ;;  %p615_p13 = pneg %p614_p12  ;;  %p620_p1 = scmp.lt.s32.totalorder %s618_s16, %s612_s14 }
  0x18   : > { %541 = vmatprep.subr.bf16.mxu1 %v674_v1  ;;  %v500_v14 = vld [vmem:[%s854_s3] ss:$0 sm:$0xff] }
  0x19   : > { %534 = vmatpush3.bf16.msra.mxu0 %v603_v2  ;;  %v504_v24 = vld [vmem:[%s856_s5] ss:$0 sm:$0xff]  ;;  %p621_p2 = por %p620_p1, %p619_p0 }
  0x1b   : > { %542 = vmatpush3.bf16.msra.mxu1 %v605_v4  ;;  %p622_p3 = pnand %p621_p2, %p615_p13 }
  0x1c   : > { %543 = vmatprep.subr.bf16.mxu1 %v674_v1  ;;  %536 = vmatmul.mubr.msk.bf16.vlgmr.msra.gmra.mxu0 %vm255_vm1, %v231_v8 }
  0x1f   : > { %544 = vmatpush3.bf16.msra.mxu1 %v606_v5 }
  0x20   : > { %545 = vmatprep.subr.bf16.mxu1 %v674_v1 }
  0x23   : > { %546 = vmatpush3.bf16.msra.mxu1 %v607_v9 }
  0x24   : > { %547 = vmatprep.subr.bf16.mxu1 %v674_v1 }
  0x27   : > { %548 = vmatpush3.bf16.msra.mxu1 %v608_v10 }
  0x28   : > { %549 = vmatprep.subr.bf16.mxu1 %v674_v1 }
  0x2b   : > { %550 = vmatpush3.bf16.msra.mxu1 %v609_v11 }
  0x2c   : > { %551 = vmatprep.subr.bf16.mxu1 %v674_v1 }
  0x2f   : > { %552 = vmatpush3.bf16.msra.mxu1 %v610_v12 }
  0x30   : > { %553 = vmatprep.subr.bf16.mxu1 %v674_v1 }
  0x33   : > { %554 = vmatpush3.bf16.msra.mxu1 %v611_v13 }
  0xdc   : > { %v293_v15 = vpop.f32.mrf.mxu0 }
  0xdd   : > { %v294_v17 = vadd.f32 %v500_v14, %v293_v15 }
  0xde   : > { %v537_v16 = vpop.f32.mrf.mxu0 }
  0xdf   : > { %v300_v21 = vmax.f32 %v294_v17, 0.0 }
  0xe0   : > { %v296_v18 = vpop.f32.mrf.mxu0 }
  0xe1   : > { %v297_v19 = vadd.f32 %v500_v14, %v296_v18 }
  0xe2   : > { %v538_v20 = vpop.f32.mrf.mxu0 }
  0xe3   : > { %v301_v22 = vmax.f32 %v297_v19, 0.0 }
  0xe5   : > { %v302_v23 = vpack.c.bf16 %v301_v22, %v300_v21 }
  0xe7   : > { %556 = vmatmul.mubr.bf16.vlgmr.msra.gmra.mxu1 %v302_v23 }
 0x1a7   : > { %v408_v25 = vpop.f32.mrf.mxu1 }
 0x1a8   : > { %v409_v26 = vadd.f32 %v504_v24, %v408_v25 }
 0x1a9   : > { %v557_v27 = vpop.f32.mrf.mxu1 }
 0x1aa   : > { %415 = vst [vmem:[%s220_s28] sm:$0xff] %v409_v26 }
 0x1ab   : > { %v411_v28 = vpop.f32.mrf.mxu1 }
 0x1ac   : > { %v412_v29 = vadd.f32 %v504_v24, %v411_v28 }
 0x1ad   : > { %v558_v30 = vpop.f32.mrf.mxu1 }
 0x1ae   : > { %416 = vst [vmem:[%s220_s28 + $0x8] sm:$0xff] %v412_v29 }
 0x1af   : > { %625 = shalt.err (!%p622_p3)
}
 0x1b0   : > { %s626_s17 = scalar_lea.hbm %s809_s12, 256  ;;  %s630_s20 = scalar_lea.hbm %s857_s6, 1024 }
 0x1b1   : > { %p627_p4 = scmp.ne.s32.totalorder %s809_s12, %s626_s17  ;;  %p631_p9 = scmp.lt.s32.totalorder %s809_s12, %s857_s6 }
 0x1b2   : > { %p632_p10 = scmp.lt.s32.totalorder %s630_s20, %s626_s17 }
 0x1b3   : > { %p628_p7 = pnand %p627_p4, %p752_p5 }
 0x1b4   : > { %p633_p11 = por %p632_p10, %p631_p9 }
 0x1b5   : > { %p629_p8 = pneg %p628_p7 }
 0x1b7   : > { %p634_p12 = pnand %p633_p11, %p629_p8 }
 0x1b9   : > { %637 = shalt.err (!%p634_p12)
}
 0x1ba   : > { %s677_s28 = smov 128   ;;  %s678_s9 = smov 8  }
 0x1bb   : > { %559 = dma.vmem_to_hbm [thread:$0]  (%p752_p5), %s804_s8, 256, %s809_s12, %s811_s13, %s677_s28, %s677_s28, %s678_s9  }
 0x1bc PF: > { %p565_p13 = scmp.ge.s32.totalorder %s672_s23, 2  ;;  %s446_s10 = sand.u32 1, %s660_s0  }
 0x1bd   : > { %s447_s11 = scalar_lea.sflag [#allocation5], %s446_s10 }
 0x1be   : > { %p562_p0 = pnand %p565_p13, %p756_p6 }
 0x1c0   : > { %p563_p1 = pneg %p562_p0 }
 0x1c2   : > { %655 = dma.done.wait (%p563_p1), %s447_s11, 256  }
 0x1c3   : > { %657 = vsyncadd (%p563_p1), %s447_s11, 4294967040  ;;  %p17_p2 = scmp.ge.s32.totalorder %s739_s26, 6   ;;  %s860_s0 = smov %s664_s21 }
 0x1c4   : > { %s861_s21 = smov %s668_s22  ;;  %s862_s22 = smov %s750_s29 }
 0x1c5   : > { %s863_s23 = smov %s739_s26  ;;  %19 = sbr.rel (!%p17_p2) target bundleno = 3 (0x3), region = 75 }
 0x1ca   :  { %452 = vsyncpa [#allocation5], 1 }
 0x1cb   :  { %454 = vsyncpa [#allocation5 + $0x1], 1 }

</bundles_post_ra>
